<compile_context>
chip_gen: v7x
topology: tpu7x:2x2x1
jax: 0.10.0
libtpu: 0.0.40
codegen_flags: <defaults>
</compile_context>

<pallas_src>
import functools

import numpy as np
import jax
import jax.numpy as jnp
from jax import lax
from jax.experimental import pallas as pl
from jax.experimental.pallas import tpu as pltpu

_LANE_CANDIDATES = (512, 256, 128)   # lane-dense minor dims (multiples of 128)
_MAX_TILE_ROWS = 1024                # (1024, 512) f32 = 2 MiB per input per grid step


def _detect_num_parts() -> int:
    """Number of leading partial-sum parts (TensorCores per chip); defensive query."""
    try:
        info = pltpu.get_tpu_info()
        for attr in ("num_cores", "core_count", "num_tensor_cores", "num_tensorcores"):
            v = getattr(info, attr, None)
            if isinstance(v, int) and v >= 1:
                return max(1, min(2, v))
    except Exception:
        pass
    # v7x has 2 TCs; on 1-TC chips the extra 'parallel' axis is just a serial loop.
    return 2


_NUM_PARTS_MAX = _detect_num_parts()


def _loss_terms(s_f32, t_f32):
    """Element-wise BCE_LOGIT loss term (inputs already float32)."""
    x = jax.nn.sigmoid(s_f32)                       # native EUP logistic, no f32 divide
    return (1.0 - t_f32) * x + jnp.log(1.0 + jnp.exp(-x))


def _native_stream(x):
    """Keep f32/bf16 in their HBM dtype (upcast in-kernel); otherwise cast to f32."""
    if x.dtype == jnp.float32 or x.dtype == jnp.bfloat16:
        return x
    return x.astype(jnp.float32)


def _bce_logit_kernel(s_ref, t_ref, out_ref, acc_ref, *,
                      blocks_per_part, rows, tile_r, fold, needs_mask, n_full):
    i = pl.program_id(1)

    @pl.when(i == 0)
    def _():
        acc_ref[...] = jnp.zeros_like(acc_ref)

    # Inputs stream in their native dtype (bf16 stays bf16 in HBM); upcast on-chip.
    s = s_ref[...].astype(jnp.float32)
    t = t_ref[...].astype(jnp.float32)
    loss = _loss_terms(s, t)                        # (tile_r, lanes) f32

    lanes = s_ref.shape[-1]

    def accum(v):
        if fold:
            # Fold sublane groups with pure VPU adds into a small (8, lanes) partial:
            # same add count as a full-tile accumulator but ~64x fewer acc vreg
            # loads/stores per step (v5e has a single vector-store slot).
            acc_ref[...] += v.reshape(tile_r // 8, 8, lanes).sum(axis=0)
        else:
            # Tiny single-block case (tile_r == rows not a multiple of 8).
            acc_ref[...] += v

    if not needs_mask:
        accum(loss)
    else:
        block_idx = pl.program_id(0) * blocks_per_part + i

        @pl.when(block_idx < n_full)
        def _():
            accum(loss)                             # full blocks: no mask cost at all

        @pl.when(block_idx >= n_full)
        def _():
            # Only the partial trailing block / clamped phantom blocks pay for the
            # iota + select.  Row-only compare (no row*lanes+col multiply); note the
            # int32 row index would only overflow for >2^31 rows (~10^12 elements).
            row = (lax.broadcasted_iota(jnp.int32, (tile_r, lanes), 0)
                   + block_idx * tile_r)
            accum(jnp.where(row < rows, loss, 0.0))  # select: garbage/NaN lanes -> 0

    @pl.when(i == pl.num_programs(1) - 1)
    def _():
        out_ref[...] = jnp.reshape(jnp.sum(acc_ref[...]), (1, 1, 1))


def bce_logit_loss(samples: jax.Array, explanations: jax.Array) -> jax.Array:
    """samples, explanations: same shape (e.g. (N, C, H, W)); returns scalar mean loss."""
    assert samples.shape == explanations.shape
    total = int(np.prod(samples.shape))

    s_flat = _native_stream(samples).reshape(-1)
    t_flat = _native_stream(explanations).reshape(-1)

    # Any non-128-aligned remainder (<128 elements) is folded in with plain XLA;
    # this avoids jnp.pad, which would re-materialize full HBM copies of both inputs.
    rem = total % 128
    main = total - rem
    tail_sum = jnp.float32(0.0)
    if rem:
        tail_sum = jnp.sum(_loss_terms(s_flat[main:].astype(jnp.float32),
                                       t_flat[main:].astype(jnp.float32)))
    if main == 0:
        # Degenerate tiny input (< 128 elements): nothing for the kernel to stream.
        return tail_sum / total

    # Largest lane-dense minor dim that divides the element count -> reshape is free.
    lanes = next(c for c in _LANE_CANDIDATES if main % c == 0)
    rows = main // lanes
    tile_r = rows if rows <= _MAX_TILE_ROWS else _MAX_TILE_ROWS

    n_blocks = pl.cdiv(rows, tile_r)
    # Enable the per-TensorCore partial-sum axis only if each part gets >= 4 blocks
    # (keeps each core's double-buffered input pipeline full on v7x).
    num_parts = _NUM_PARTS_MAX if n_blocks >= 4 * _NUM_PARTS_MAX else 1
    blocks_per_part = pl.cdiv(n_blocks, num_parts)

    needs_mask = (num_parts * blocks_per_part * tile_r != rows)
    n_full = rows // tile_r                 # blocks that are fully in-bounds
    fold = (tile_r % 8 == 0)
    acc_rows = 8 if fold else tile_r

    s_main = s_flat[:main] if rem else s_flat
    t_main = t_flat[:main] if rem else t_flat
    s2 = s_main.reshape(rows, lanes)
    t2 = t_main.reshape(rows, lanes)

    kernel = functools.partial(
        _bce_logit_kernel,
        blocks_per_part=blocks_per_part, rows=rows, tile_r=tile_r,
        fold=fold, needs_mask=needs_mask, n_full=n_full)

    # Clamp phantom block indices (grid padded to num_parts*blocks_per_part) to the
    # last real block so no fully-out-of-bounds DMA is issued; they are fully masked.
    last_block = n_blocks - 1
    in_map = lambda p, i: (jnp.minimum(p * blocks_per_part + i, last_block), 0)

    partial_sums = pl.pallas_call(
        kernel,
        out_shape=jax.ShapeDtypeStruct((num_parts, 1, 1), jnp.float32),
        grid_spec=pltpu.PrefetchScalarGridSpec(
            num_scalar_prefetch=0,
            grid=(num_parts, blocks_per_part),
            in_specs=[
                pl.BlockSpec((tile_r, lanes), in_map),
                pl.BlockSpec((tile_r, lanes), in_map),
            ],
            out_specs=pl.BlockSpec((1, 1, 1), lambda p, i: (p, 0, 0)),
            scratch_shapes=[pltpu.VMEM((acc_rows, lanes), jnp.float32)],
        ),
        compiler_params=pltpu.CompilerParams(
            dimension_semantics=("parallel", "arbitrary"),
        ),
    )(s2, t2)

    # torch.mean over the true N*C*H*W element count.
    return (jnp.sum(partial_sums) + tail_sum) / total


if __name__ == "__main__":
    key = jax.random.PRNGKey(0)
    k1, k2 = jax.random.split(key)

    N, C, H, W = 2, 4, 16, 16
    samples = jax.random.normal(k1, (N, C, H, W), dtype=jnp.float32)
    explanations = jax.random.uniform(k2, (N, C, H, W), dtype=jnp.float32)

    loss = jax.jit(bce_logit_loss)(samples, explanations)
    jax.block_until_ready(loss)

    # Pure-JAX reference (identical math, XLA-computed) for a correctness check.
    x = jax.nn.sigmoid(samples)
    ref = jnp.mean((1.0 - explanations) * x + jnp.log(1.0 + jnp.exp(-x)))
    np.testing.assert_allclose(np.asarray(loss), np.asarray(ref), rtol=1e-5, atol=1e-6)

    print("KERNEL_OK")
</pallas_src>

<mosaic_0001>
module attributes {stable_mosaic.version = 11 : i64} {
  func.func @_bce_logit_kernel(%arg0: i32, %arg1: i32, %arg2: memref<4x512xf32, #tpu.memory_space<vmem>>, %arg3: memref<4x512xf32, #tpu.memory_space<vmem>>, %arg4: memref<1x1x1xf32, #tpu.memory_space<vmem>>, %arg5: memref<4x512xf32, #tpu.memory_space<vmem>>) attributes {dimension_semantics = [#tpu.dimension_semantics<parallel>, #tpu.dimension_semantics<arbitrary>], iteration_bounds = array<i64: 1, 1>, scalar_prefetch = 0 : i64, scratch_operands = 1 : i64, tpu.core_type = #tpu.core_type<tc>, window_params = [{transform_indices = @transform_0, window_bounds = array<i64: 4, 512>}, {transform_indices = @transform_1, window_bounds = array<i64: 4, 512>}, {transform_indices = @transform_2, window_bounds = array<i64: 1, 1, 1>}]} {
    %c0_i32 = arith.constant 0 : i32
    %0 = arith.cmpi eq, %arg1, %c0_i32 : i32
    %1 = arith.extui %0 : i1 to i32
    %c0_i32_0 = arith.constant 0 : i32
    %2 = arith.cmpi ne, %1, %c0_i32_0 : i32
    scf.if %2 {
      %cst_13 = arith.constant 0.000000e+00 : f32
      %26 = vector.broadcast %cst_13 : f32 to vector<4x512xf32>
      %c0_14 = arith.constant 0 : index
      %c0_15 = arith.constant 0 : index
      %27 = vector.load %arg5[%c0_14, %c0_15] : memref<4x512xf32, #tpu.memory_space<vmem>>, vector<4x512xf32>
      tpu.vector_store %arg5[%c0_14, %c0_15], %26 {strides = array<i32>} : memref<4x512xf32, #tpu.memory_space<vmem>>, vector<4x512xf32>,
    } else {
    }
    %c0 = arith.constant 0 : index
    %c0_1 = arith.constant 0 : index
    %3 = vector.load %arg2[%c0, %c0_1] : memref<4x512xf32, #tpu.memory_space<vmem>>, vector<4x512xf32>
    %c0_2 = arith.constant 0 : index
    %c0_3 = arith.constant 0 : index
    %4 = vector.load %arg3[%c0_2, %c0_3] : memref<4x512xf32, #tpu.memory_space<vmem>>, vector<4x512xf32>
    %5 = arith.negf %3 : vector<4x512xf32>
    %6 = math.exp %5 : vector<4x512xf32>
    %cst = arith.constant 1.000000e+00 : f32
    %7 = vector.broadcast %cst : f32 to vector<4x512xf32>
    %8 = arith.addf %7, %6 : vector<4x512xf32>
    %9 = arith.divf %7, %8 : vector<4x512xf32>
    %cst_4 = arith.constant 1.000000e+00 : f32
    %10 = vector.broadcast %cst_4 : f32 to vector<4x512xf32>
    %11 = arith.subf %10, %4 : vector<4x512xf32>
    %12 = arith.mulf %11, %9 : vector<4x512xf32>
    %cst_5 = arith.constant 0.000000e+00 : f32
    %13 = vector.broadcast %cst_5 : f32 to vector<4x512xf32>
    %14 = arith.subf %13, %9 : vector<4x512xf32>
    %15 = math.exp %14 : vector<4x512xf32>
    %cst_6 = arith.constant 1.000000e+00 : f32
    %16 = vector.broadcast %cst_6 : f32 to vector<4x512xf32>
    %17 = arith.addf %16, %15 : vector<4x512xf32>
    %18 = math.log %17 : vector<4x512xf32>
    %19 = arith.addf %12, %18 : vector<4x512xf32>
    %c0_7 = arith.constant 0 : index
    %c0_8 = arith.constant 0 : index
    %20 = vector.load %arg5[%c0_7, %c0_8] : memref<4x512xf32, #tpu.memory_space<vmem>>, vector<4x512xf32>
    %21 = arith.addf %20, %19 : vector<4x512xf32>
    %c0_9 = arith.constant 0 : index
    %c0_10 = arith.constant 0 : index
    %22 = vector.load %arg5[%c0_9, %c0_10] : memref<4x512xf32, #tpu.memory_space<vmem>>, vector<4x512xf32>
    tpu.vector_store %arg5[%c0_9, %c0_10], %21 {strides = array<i32>} : memref<4x512xf32, #tpu.memory_space<vmem>>, vector<4x512xf32>,
    %c0_i32_11 = arith.constant 0 : i32
    %23 = arith.cmpi eq, %arg1, %c0_i32_11 : i32
    %24 = arith.extui %23 : i1 to i32
    %c0_i32_12 = arith.constant 0 : i32
    %25 = arith.cmpi ne, %24, %c0_i32_12 : i32
    scf.if %25 {
      %c0_13 = arith.constant 0 : index
      %c0_14 = arith.constant 0 : index
      %26 = vector.load %arg5[%c0_13, %c0_14] : memref<4x512xf32, #tpu.memory_space<vmem>>, vector<4x512xf32>
      %27 = vector.shape_cast %26 : vector<4x512xf32> to vector<1x4x512xf32>
      %cst_15 = arith.constant dense<0.000000e+00> : vector<1xf32>
      %28 = vector.multi_reduction <add>, %27, %cst_15 [1, 2] : vector<1x4x512xf32> to vector<1xf32>
      %29 = vector.shape_cast %28 : vector<1xf32> to vector<1x1x1xf32>
      %30 = vector.extract %29[0, 0, 0] : f32 from vector<1x1x1xf32>
      %31 = vector.broadcast %30 : f32 to vector<1x1x1xf32>
      %c0_16 = arith.constant 0 : index
      %c0_17 = arith.constant 0 : index
      %c0_18 = arith.constant 0 : index
      %32 = vector.load %arg4[%c0_16, %c0_17, %c0_18] : memref<1x1x1xf32, #tpu.memory_space<vmem>>, vector<1x1x1xf32>
      tpu.vector_store %arg4[%c0_16, %c0_17, %c0_18], %31 {strides = array<i32>} : memref<1x1x1xf32, #tpu.memory_space<vmem>>, vector<1x1x1xf32>,
    } else {
    }
    return
  }
  func.func @transform_0(%arg0: i32, %arg1: i32) -> (i32, i32) {
    %c1_i32 = arith.constant 1 : i32
    %0 = arith.muli %arg0, %c1_i32 : i32
    %1 = arith.addi %0, %arg1 : i32
    %c0_i32 = arith.constant 0 : i32
    %2 = arith.minsi %1, %c0_i32 : i32
    %c0_i32_0 = arith.constant 0 : i32
    %c0_i32_1 = arith.constant 0 : i32
    return %2, %c0_i32_0 : i32, i32
  }
  func.func @transform_1(%arg0: i32, %arg1: i32) -> (i32, i32) {
    %c1_i32 = arith.constant 1 : i32
    %0 = arith.muli %arg0, %c1_i32 : i32
    %1 = arith.addi %0, %arg1 : i32
    %c0_i32 = arith.constant 0 : i32
    %2 = arith.minsi %1, %c0_i32 : i32
    %c0_i32_0 = arith.constant 0 : i32
    %c0_i32_1 = arith.constant 0 : i32
    return %2, %c0_i32_0 : i32, i32
  }
  func.func @transform_2(%arg0: i32, %arg1: i32) -> (i32, i32, i32) {
    %c0_i32 = arith.constant 0 : i32
    %c0_i32_0 = arith.constant 0 : i32
    %c0_i32_1 = arith.constant 0 : i32
    return %arg0, %c0_i32, %c0_i32_0 : i32, i32, i32
  }
}

</mosaic_0001>

<bundles_post_ra>
// kernel: bce_logit_loss.1
= control target key start
LH: loop header
LB: loop body
LE: loop exit
PB: predicated region body
PF: predicated region fallthrough
CT: control target
= control target key end

     0   :  { %s260_s0 = inlined_call_operand.vmem [shape: f32[4,512], index: 0, kind: input, shape index: {}]   ;;  %s261_s1 = inlined_call_operand.vmem [shape: f32[4,512], index: 1, kind: input, shape index: {}]   ;;  %s262_s2 = inlined_call_operand.hbm [shape: f32[1,1,1], index: 2, kind: output, shape index: {}]  }
   0x1   :  { %v78_v0 = vld [vmem:[%s260_s0] sm:$0xff]  ;;  %v79_v1 = vld [vmem:[%s260_s0 + $0x8] sm:$0xff] }
   0x2   :  { %v175_v2 = vmul.f32 -1.442695, %v78_v0  ;;  %v176_v3 = vmul.f32 -1.442695, %v79_v1 }
   0x3   :  { %7 = vsyncpa [#allocation4], 0  ;;  %v80_v18 = vld [vmem:[%s261_s1] sm:$0xff]  ;;  %v81_v19 = vld [vmem:[%s261_s1 + $0x8] sm:$0xff]  ;;  %vm129_vm0 = vcmask 1043456   ;;  %s220_s1 = smov [#allocation3]  }
   0x4   :  { %180 = vpow2.f32 %v175_v2  ;;  %v94_v20 = vsub.f32 1.0, %v80_v18  ;;  %v95_v21 = vsub.f32 1.0, %v81_v19  ;;  %s155_s16 = sshll.u32 %s220_s1, 4  ;;  %vm147_vm1 = vcmask 0   ;;  %s156_s16 = int_to_ptr.vmem [resolvable:$true] %s155_s16 }
   0x5   :  { %182 = vpow2.f32 %v176_v3  ;;  %s196_s18 = scalar_lea.vmem %s156_s16, 16  ;;  %s200_s19 = scalar_lea.vmem %s156_s16, 32 }
   0x6   :  { %p197_p0 = scmp.ne.s32.totalorder %s156_s16, %s196_s18  ;;  %p201_p1 = scmp.lt.s32.totalorder %s156_s16, %s156_s16 }
   0x7   :  { %p202_p2 = scmp.lt.s32.totalorder %s200_s19, %s196_s18 }
   0x9   :  { %p203_p3 = por %p202_p2, %p201_p1 }
   0xb   :  { %p204_p4 = pnand %p203_p3, %p197_p0 }
   0xe   :  { %v181_v4 = vpop.eup %180 }
   0xf   :  { %v183_v5 = vpop.eup %182  ;;  %v88_v6 = vadd.f32 1.0, %v181_v4 }
  0x10   :  { %v89_v7 = vadd.f32 1.0, %v183_v5 }
  0x11   :  { %184 = vrcp.f32 %v88_v6 }
  0x12   :  { %186 = vrcp.f32 %v89_v7 }
  0x1b   :  { %v185_v8 = vpop.eup %184 }
  0x1c   :  { %v187_v9 = vpop.eup %186  ;;  %v98_v10 = vsub.f32 0.0, %v185_v8  ;;  %v96_v22 = vmul.f32 %v185_v8, %v94_v20 }
  0x1d   :  { %v99_v11 = vsub.f32 0.0, %v187_v9  ;;  %v97_v24 = vmul.f32 %v187_v9, %v95_v21 }
  0x1e   :  { %v100_v12 = vmul.f32 1.442695, %v98_v10 }
  0x1f   :  { %v102_v13 = vmul.f32 1.442695, %v99_v11 }
  0x20   :  { %188 = vpow2.f32 %v100_v12 }
  0x21   :  { %190 = vpow2.f32 %v102_v13 }
  0x2a   :  { %v189_v14 = vpop.eup %188 }
  0x2b   :  { %v191_v15 = vpop.eup %190  ;;  %v104_v16 = vadd.f32 1.0, %v189_v14 }
  0x2c   :  { %v105_v17 = vadd.f32 1.0, %v191_v15 }
  0x2d   :  { %192 = vlog2.f32 %v104_v16 }
  0x2e   :  { %194 = vlog2.f32 %v105_v17 }
  0x37   :  { %v193_v23 = vpop.eup %192 }
  0x38   :  { %v195_v25 = vpop.eup %194  ;;  %v107_v26 = vmul.f32 0.6931472, %v193_v23 }
  0x39   :  { %v109_v27 = vmul.f32 0.6931472, %v195_v25 }
  0x3a   :  { %v110_v28 = vadd.f32 %v107_v26, %v96_v22 }
  0x3b   :  { %v111_v29 = vadd.f32 %v109_v27, %v97_v24 }
  0x3c   :  { %v125_v30 = vcombine.high %v110_v28, %v110_v28  ;;  %v130_v31 = vsel %vm129_vm0, %v110_v28, 0.0 }
  0x3d   :  { %v126_v32 = vcombine.high %v111_v29, %v111_v29  ;;  %v133_v34 = vsel %vm129_vm0, %v111_v29, 0.0 }
  0x3e   :  { %v131_v33 = vsel %vm129_vm0, %v125_v30, 0.0 }
  0x3f   :  { %v132_v35 = vadd.f32 %v131_v33, %v130_v31  ;;  %v135_v36 = vsel %vm129_vm0, %v126_v32, 0.0 }
  0x41   :  { %v134_v37 = vadd.f32 %v133_v34, %v132_v35 }
  0x43   :  { %v136_v38 = vadd.f32 %v135_v36, %v134_v37 }
  0x45   :  { %137 = vadd.xlane.f32.xlu0 %v136_v38 }
  0xd2   :  { %v138_v39 = vpop.xlane.xlu0 %137 }
  0xd3   :  { %v139_v40 = vrot.slane %v138_v39, 4 }
  0xd5   :  { %v140_v41 = vadd.f32 %v139_v40, %v138_v39 }
  0xd7   :  { %v141_v42 = vrot.slane %v140_v41, 2 }
  0xd9   :  { %v142_v43 = vadd.f32 %v141_v42, %v140_v41 }
  0xdb   :  { %v143_v44 = vrot.slane %v142_v43, 1 }
  0xdd   :  { %v144_v45 = vadd.f32 %v143_v44, %v142_v43 }
  0xdf   :  { %177 = vpush %v144_v45 }
 0x110   :  { %s178_s17 = spop %177 }
 0x111   :  { %v146_v46 = vstv %s178_s17 }
 0x112   :  { %148 = vst.msk [vmem:[#allocation3] sm:$0x1] %vm147_vm1, %v146_v46 }
 0x113   :  { %207 = shalt.err (!%p204_p4)
}
 0x114   :  { %s208_s22 = scalar_lea.hbm %s262_s2, 16 }
 0x115   :  { %p209_p5 = scmp.ne.s32.totalorder %s262_s2, %s208_s22  ;;  %p212_p6 = scmp.lt.u32.totalorder %s208_s22, %s262_s2 }
 0x117   :  { %p214_p7 = pnand %p212_p6, %p209_p5 }
 0x119   :  { %217 = shalt.err (!%p214_p7)
}
 0x11a   :  { %158 = dma.vmem_to_hbm [thread:$0]  %s156_s16, 16, %s262_s2, [#allocation4]  }
 0x11b   :  { %218 = dma.done.wait [#allocation4], 16  }
 0x11c   :  { %219 = vsyncadd [#allocation4], 4294967280 }
 0x11d   :  { %162 = vsyncpa [#allocation4], 1 }

</bundles_post_ra>
